<compile_context>
chip_gen: v6e
topology: v6e:2x2x1
jax: 0.10.0
libtpu: 0.0.40
codegen_flags: <defaults>
</compile_context>

<pallas_src>
import jax
import jax.numpy as jnp
from jax.experimental import pallas as pl
from jax.experimental.pallas import tpu as pltpu

SELU_ALPHA = 1.6732632423543772
SELU_SCALE = 1.0507009873554805


def _selu(x):
    # SELU(x) = scale * (max(0, x) + min(0, alpha * (exp(x) - 1)))
    return SELU_SCALE * jnp.where(x > 0, x, SELU_ALPHA * (jnp.exp(x) - 1.0))


def critic_kernel(x_ref, w1_ref, b1_ref, w2_ref, b2_ref, w3_ref, b3_ref, out_ref):
    # x_ref : (K, TB)     activations, batch on the lane axis (compute dtype)
    # w1_ref: (H1, K)     w2_ref: (H2, H1)      -- PyTorch (out, in) layout, no transpose
    # b1_ref: (H1, 1)     b2_ref: (H2, 1)       f32 columns, broadcast over lanes
    # w3_ref: (H2, 1)     f32 column (used on the VPU)
    # b3_ref: (1,)        SMEM scalar
    # out_ref: (1, TB)    lane-dense output
    x = x_ref[...]

    # fc1 (single fused dot over the concatenated [s, a] features) + SELU in f32.
    h1 = jnp.dot(w1_ref[...], x, preferred_element_type=jnp.float32) + b1_ref[...]
    h1 = _selu(h1)

    # fc2 + SELU; cast back to the matmul dtype only for the MXU operand.
    h2 = jnp.dot(w2_ref[...], h1.astype(w2_ref.dtype),
                 preferred_element_type=jnp.float32) + b2_ref[...]
    h2 = _selu(h2)

    # fc3: N=1 matmul replaced by VPU multiply + cross-sublane reduce (XLU).
    out = jnp.sum(h2 * w3_ref[...], axis=0, keepdims=True) + b3_ref[0]
    out_ref[...] = out.astype(out_ref.dtype)


def prepare_critic_params(params, compute_dtype=jnp.float32):
    """One-time parameter preprocessing (hoisted out of the per-call wrapper).

    compute_dtype controls the dtype of the MXU operands (jnp.bfloat16 for the
    native MXU path on v6e/v7x).  Biases / w3 stay f32 (VPU epilogue).
    """
    return dict(
        w1=params["w1"].astype(compute_dtype),           # (H1, K)   PyTorch layout
        b1=params["b1"].astype(jnp.float32)[:, None],    # (H1, 1)
        w2=params["w2"].astype(compute_dtype),           # (H2, H1)
        b2=params["b2"].astype(jnp.float32)[:, None],    # (H2, 1)
        w3=params["w3"].astype(jnp.float32).T,           # (H2, 1)
        b3=params["b3"].astype(jnp.float32),             # (1,)
    )


def critic_forward(s, a, prepared, *, block_b=512):
    """s: (B, nb_status), a: (B, nb_actions) -> (B, 1)"""
    B = s.shape[0]
    compute_dtype = prepared["w1"].dtype
    H1, K = prepared["w1"].shape
    H2 = prepared["w2"].shape[0]

    # Fused fc1 input: concat along features, transposed so batch is on the lane axis.
    x_t = jnp.concatenate([s, a], axis=1).T.astype(compute_dtype)   # (K, B)

    # Batch tiling: either the full batch (single block) or lane-aligned tiles.
    if B <= block_b:
        TB, Bp = B, B
    else:
        TB = max(128, (block_b // 128) * 128)          # keep the lane dim 128-aligned
        Bp = pl.cdiv(B, TB) * TB
        if Bp != B:
            x_t = jnp.pad(x_t, ((0, 0), (0, Bp - B)))
    grid = (Bp // TB,)

    resident = lambda shape: pl.BlockSpec(shape, lambda i: (0, 0))  # VMEM-resident weights

    out_t = pl.pallas_call(
        critic_kernel,
        out_shape=jax.ShapeDtypeStruct((1, Bp), jnp.float32),
        grid=grid,
        in_specs=[
            pl.BlockSpec((K, TB), lambda i: (0, i)),        # activations, tiled over batch
            resident((H1, K)),                              # w1
            resident((H1, 1)),                              # b1
            resident((H2, H1)),                             # w2
            resident((H2, 1)),                              # b2
            resident((H2, 1)),                              # w3 column
            pl.BlockSpec(memory_space=pltpu.MemorySpace.SMEM),   # b3 scalar
        ],
        out_specs=pl.BlockSpec((1, TB), lambda i: (0, i)),  # lane-dense output
        compiler_params=pltpu.CompilerParams(
            dimension_semantics=("parallel",),
        ),
    )(x_t, prepared["w1"], prepared["b1"], prepared["w2"], prepared["b2"],
      prepared["w3"], prepared["b3"])

    return out_t[:, :B].T   # (B, 1), matching the PyTorch output layout


def init_critic_params(key, nb_status, nb_actions, hidden1, hidden2, init_w=3e-4):
    """Deterministic synthetic init mirroring the PyTorch shapes / fanin_init."""
    kin = nb_status + nb_actions
    ks = jax.random.split(key, 6)

    def uniform(k, shape, bound):
        return jax.random.uniform(k, shape, jnp.float32, -bound, bound)

    # fanin_init uses size[0] (== out_features) as "fanin", mirror that.
    w1 = uniform(ks[0], (hidden1, kin), 1.0 / jnp.sqrt(hidden1))
    b1 = uniform(ks[1], (hidden1,), 1.0 / jnp.sqrt(kin))       # default Linear bias init
    w2 = uniform(ks[2], (hidden2, hidden1), 1.0 / jnp.sqrt(hidden2))
    b2 = uniform(ks[3], (hidden2,), 1.0 / jnp.sqrt(hidden1))
    w3 = uniform(ks[4], (1, hidden2), init_w)
    b3 = uniform(ks[5], (1,), 1.0 / jnp.sqrt(hidden2))
    return dict(w1=w1, b1=b1, w2=w2, b2=b2, w3=w3, b3=b3)


def critic_reference(s, a, p):
    """Pure-JAX reference for correctness checking."""
    x = jnp.concatenate([s, a], axis=1)
    h1 = _selu(x @ p["w1"].T + p["b1"])
    h2 = _selu(h1 @ p["w2"].T + p["b2"])
    return h2 @ p["w3"].T + p["b3"]


if __name__ == "__main__":
    key = jax.random.PRNGKey(0)
    k_s, k_a, k_p = jax.random.split(key, 3)

    B, nb_status, nb_actions = 8, 20, 12
    hidden1, hidden2 = 64, 32

    s = jax.random.normal(k_s, (B, nb_status), jnp.float32)
    a = jax.random.normal(k_a, (B, nb_actions), jnp.float32)
    params = init_critic_params(k_p, nb_status, nb_actions, hidden1, hidden2)
    ref = critic_reference(s, a, params)

    # f32 path (matches the pure-JAX reference to tight tolerance).
    prep_f32 = prepare_critic_params(params, compute_dtype=jnp.float32)
    out = jax.block_until_ready(critic_forward(s, a, prep_f32))
    assert out.shape == (B, 1)
    assert jnp.allclose(out, ref, atol=1e-5, rtol=1e-5), (out, ref)

    # bf16 MXU-operand path (SELU / bias epilogues stay f32); looser tolerance.
    prep_bf16 = prepare_critic_params(params, compute_dtype=jnp.bfloat16)
    out16 = jax.block_until_ready(critic_forward(s, a, prep_bf16))
    assert out16.shape == (B, 1)
    assert jnp.allclose(out16, ref, atol=5e-2, rtol=5e-2), (out16, ref)

    # Larger batch exercising the batch grid + lane padding path.
    B2 = 384
    s2 = jax.random.normal(k_s, (B2, nb_status), jnp.float32)
    a2 = jax.random.normal(k_a, (B2, nb_actions), jnp.float32)
    out2 = jax.block_until_ready(critic_forward(s2, a2, prep_f32, block_b=256))
    ref2 = critic_reference(s2, a2, params)
    assert out2.shape == (B2, 1)
    assert jnp.allclose(out2, ref2, atol=1e-4, rtol=1e-4)

    print("KERNEL_OK")
</pallas_src>

<mosaic_0001>
module attributes {stable_mosaic.version = 11 : i64} {
  func.func @critic_kernel(%arg0: i32, %arg1: memref<32x8xf32, #tpu.memory_space<vmem>>, %arg2: memref<64x32xf32, #tpu.memory_space<vmem>>, %arg3: memref<64x1xf32, #tpu.memory_space<vmem>>, %arg4: memref<32x64xf32, #tpu.memory_space<vmem>>, %arg5: memref<32x1xf32, #tpu.memory_space<vmem>>, %arg6: memref<32x1xf32, #tpu.memory_space<vmem>>, %arg7: memref<1xf32, #tpu.memory_space<smem>>, %arg8: memref<1x8xf32, #tpu.memory_space<vmem>>) attributes {dimension_semantics = [#tpu.dimension_semantics<parallel>], iteration_bounds = array<i64: 1>, scalar_prefetch = 0 : i64, scratch_operands = 0 : i64, tpu.core_type = #tpu.core_type<tc>, window_params = [{transform_indices = @transform_0, window_bounds = array<i64: 32, 8>}, {pipeline_mode = #tpu.pipeline_mode<synchronous>, transform_indices = @transform_1, window_bounds = array<i64: 64, 32>}, {pipeline_mode = #tpu.pipeline_mode<synchronous>, transform_indices = @transform_2, window_bounds = array<i64: 64, 1>}, {pipeline_mode = #tpu.pipeline_mode<synchronous>, transform_indices = @transform_3, window_bounds = array<i64: 32, 64>}, {pipeline_mode = #tpu.pipeline_mode<synchronous>, transform_indices = @transform_4, window_bounds = array<i64: 32, 1>}, {pipeline_mode = #tpu.pipeline_mode<synchronous>, transform_indices = @transform_5, window_bounds = array<i64: 32, 1>}, {transform_indices = @transform_6, window_bounds = array<i64: 1>}, {transform_indices = @transform_7, window_bounds = array<i64: 1, 8>}]} {
    %c0 = arith.constant 0 : index
    %c0_0 = arith.constant 0 : index
    %0 = vector.load %arg1[%c0, %c0_0] : memref<32x8xf32, #tpu.memory_space<vmem>>, vector<32x8xf32>
    %c0_1 = arith.constant 0 : index
    %c0_2 = arith.constant 0 : index
    %1 = vector.load %arg2[%c0_1, %c0_2] : memref<64x32xf32, #tpu.memory_space<vmem>>, vector<64x32xf32>
    %cst = arith.constant dense<0.000000e+00> : vector<64x8xf32>
    %2 = tpu.matmul %1, %0, %cst {dimension_numbers = #tpu.dot_dimension_numbers<[1], [0], [0], [1], [0, 0, 1, 1], [], []>} : vector<64x32xf32>, vector<32x8xf32>, vector<64x8xf32> -> vector<64x8xf32>
    %c0_3 = arith.constant 0 : index
    %c0_4 = arith.constant 0 : index
    %3 = vector.load %arg3[%c0_3, %c0_4] : memref<64x1xf32, #tpu.memory_space<vmem>>, vector<64x1xf32>
    %4 = vector.broadcast %3 : vector<64x1xf32> to vector<64x8xf32>
    %5 = arith.addf %2, %4 : vector<64x8xf32>
    %cst_5 = arith.constant 0.000000e+00 : f32
    %6 = vector.broadcast %cst_5 : f32 to vector<64x8xf32>
    %7 = arith.cmpf ogt, %5, %6 : vector<64x8xf32>
    %8 = math.exp %5 : vector<64x8xf32>
    %cst_6 = arith.constant 1.000000e+00 : f32
    %9 = vector.broadcast %cst_6 : f32 to vector<64x8xf32>
    %10 = arith.subf %8, %9 : vector<64x8xf32>
    %cst_7 = arith.constant 1.67326319 : f32
    %11 = vector.broadcast %cst_7 : f32 to vector<64x8xf32>
    %12 = arith.mulf %11, %10 : vector<64x8xf32>
    %13 = arith.select %7, %5, %12 : vector<64x8xi1>, vector<64x8xf32>
    %cst_8 = arith.constant 1.05070102 : f32
    %14 = vector.broadcast %cst_8 : f32 to vector<64x8xf32>
    %15 = arith.mulf %14, %13 : vector<64x8xf32>
    %c0_9 = arith.constant 0 : index
    %c0_10 = arith.constant 0 : index
    %16 = vector.load %arg4[%c0_9, %c0_10] : memref<32x64xf32, #tpu.memory_space<vmem>>, vector<32x64xf32>
    %cst_11 = arith.constant dense<0.000000e+00> : vector<32x8xf32>
    %17 = tpu.matmul %16, %15, %cst_11 {dimension_numbers = #tpu.dot_dimension_numbers<[1], [0], [0], [1], [0, 0, 1, 1], [], []>} : vector<32x64xf32>, vector<64x8xf32>, vector<32x8xf32> -> vector<32x8xf32>
    %c0_12 = arith.constant 0 : index
    %c0_13 = arith.constant 0 : index
    %18 = vector.load %arg5[%c0_12, %c0_13] : memref<32x1xf32, #tpu.memory_space<vmem>>, vector<32x1xf32>
    %19 = vector.broadcast %18 : vector<32x1xf32> to vector<32x8xf32>
    %20 = arith.addf %17, %19 : vector<32x8xf32>
    %cst_14 = arith.constant 0.000000e+00 : f32
    %21 = vector.broadcast %cst_14 : f32 to vector<32x8xf32>
    %22 = arith.cmpf ogt, %20, %21 : vector<32x8xf32>
    %23 = math.exp %20 : vector<32x8xf32>
    %cst_15 = arith.constant 1.000000e+00 : f32
    %24 = vector.broadcast %cst_15 : f32 to vector<32x8xf32>
    %25 = arith.subf %23, %24 : vector<32x8xf32>
    %cst_16 = arith.constant 1.67326319 : f32
    %26 = vector.broadcast %cst_16 : f32 to vector<32x8xf32>
    %27 = arith.mulf %26, %25 : vector<32x8xf32>
    %28 = arith.select %22, %20, %27 : vector<32x8xi1>, vector<32x8xf32>
    %cst_17 = arith.constant 1.05070102 : f32
    %29 = vector.broadcast %cst_17 : f32 to vector<32x8xf32>
    %30 = arith.mulf %29, %28 : vector<32x8xf32>
    %c0_18 = arith.constant 0 : index
    %c0_19 = arith.constant 0 : index
    %31 = vector.load %arg6[%c0_18, %c0_19] : memref<32x1xf32, #tpu.memory_space<vmem>>, vector<32x1xf32>
    %32 = vector.broadcast %31 : vector<32x1xf32> to vector<32x8xf32>
    %33 = arith.mulf %30, %32 : vector<32x8xf32>
    %cst_20 = arith.constant dense<0.000000e+00> : vector<8xf32>
    %34 = vector.multi_reduction <add>, %33, %cst_20 [0] : vector<32x8xf32> to vector<8xf32>
    %35 = vector.shape_cast %34 : vector<8xf32> to vector<1x8xf32>
    %c0_21 = arith.constant 0 : index
    %36 = memref.load %arg7[%c0_21] : memref<1xf32, #tpu.memory_space<smem>>
    %37 = vector.broadcast %36 : f32 to vector<1x8xf32>
    %38 = arith.addf %35, %37 : vector<1x8xf32>
    %c0_22 = arith.constant 0 : index
    %c0_23 = arith.constant 0 : index
    %39 = vector.load %arg8[%c0_22, %c0_23] : memref<1x8xf32, #tpu.memory_space<vmem>>, vector<1x8xf32>
    tpu.vector_store %arg8[%c0_22, %c0_23], %38 {strides = array<i32>} : memref<1x8xf32, #tpu.memory_space<vmem>>, vector<1x8xf32>,
    return
  }
  func.func @transform_0(%arg0: i32) -> (i32, i32) {
    %c0_i32 = arith.constant 0 : i32
    %c0_i32_0 = arith.constant 0 : i32
    return %c0_i32, %arg0 : i32, i32
  }
  func.func @transform_1(%arg0: i32) -> (i32, i32) {
    %c0_i32 = arith.constant 0 : i32
    %c0_i32_0 = arith.constant 0 : i32
    %c0_i32_1 = arith.constant 0 : i32
    return %c0_i32, %c0_i32_0 : i32, i32
  }
  func.func @transform_2(%arg0: i32) -> (i32, i32) {
    %c0_i32 = arith.constant 0 : i32
    %c0_i32_0 = arith.constant 0 : i32
    %c0_i32_1 = arith.constant 0 : i32
    return %c0_i32, %c0_i32_0 : i32, i32
  }
  func.func @transform_3(%arg0: i32) -> (i32, i32) {
    %c0_i32 = arith.constant 0 : i32
    %c0_i32_0 = arith.constant 0 : i32
    %c0_i32_1 = arith.constant 0 : i32
    return %c0_i32, %c0_i32_0 : i32, i32
  }
  func.func @transform_4(%arg0: i32) -> (i32, i32) {
    %c0_i32 = arith.constant 0 : i32
    %c0_i32_0 = arith.constant 0 : i32
    %c0_i32_1 = arith.constant 0 : i32
    return %c0_i32, %c0_i32_0 : i32, i32
  }
  func.func @transform_5(%arg0: i32) -> (i32, i32) {
    %c0_i32 = arith.constant 0 : i32
    %c0_i32_0 = arith.constant 0 : i32
    %c0_i32_1 = arith.constant 0 : i32
    return %c0_i32, %c0_i32_0 : i32, i32
  }
  func.func @transform_6(%arg0: i32) -> i32 {
    %c0_i32 = arith.constant 0 : i32
    %c0_i32_0 = arith.constant 0 : i32
    return %c0_i32 : i32
  }
  func.func @transform_7(%arg0: i32) -> (i32, i32) {
    %c0_i32 = arith.constant 0 : i32
    %c0_i32_0 = arith.constant 0 : i32
    return %c0_i32, %arg0 : i32, i32
  }
}

</mosaic_0001>

<bundles_post_ra>
// kernel: tpu_custom_call.1
= control target key start
LH: loop header
LB: loop body
LE: loop exit
PB: predicated region body
PF: predicated region fallthrough
CT: control target
= control target key end

     0   :  { %vm88_vm0 = vcmask 261120   ;;  %v629_v3 = vmov 0   ;;  %s805_s0 = inlined_call_operand.vmem [shape: f32[32,8], index: 0, kind: input, shape index: {}]   ;;  %s806_s1 = inlined_call_operand.vmem [shape: f32[64,32], index: 1, kind: input, shape index: {}]   ;;  %s807_s2 = inlined_call_operand.vmem [shape: f32[64,1], index: 2, kind: input, shape index: {}]   ;;  %s808_s3 = inlined_call_operand.vmem [shape: f32[32,64], index: 3, kind: input, shape index: {}]   ;;  %s809_s4 = inlined_call_operand.vmem [shape: f32[32,1], index: 4, kind: input, shape index: {}]   ;;  %s810_s5 = inlined_call_operand.vmem [shape: f32[32,1], index: 5, kind: input, shape index: {}]   ;;  %s811_s6 = inlined_call_operand.<no memory space> [shape: f32[1], index: 6, kind: input, shape index: {}]   ;;  %s812_s7 = inlined_call_operand.hbm [shape: f32[1,8], index: 7, kind: output, shape index: {}]  }
   0x1   :  { %v31_v0 = vld [vmem:[%s805_s0 + $0x18] sm:$0xff]  ;;  %v30_v1 = vld [vmem:[%s805_s0 + $0x10] sm:$0xff]  ;;  %v32_v2 = vld [vmem:[%s806_s1] sm:$0xff]  ;;  %581 = vset.pattern.permute.xlu0 %v629_v3  ;;  %582 = vset.pattern.permute.xlu1 %v629_v3 }
   0x2   :  { %537 = vmatprep.subr.mxu0 %v31_v0  ;;  %v29_v4 = vld [vmem:[%s805_s0 + $0x8] sm:$0xff]  ;;  %545 = vmatprep.mubr.msk.f32.mxu0 %vm88_vm0, %v32_v2  ;;  %v28_v5 = vld [vmem:[%s805_s0] sm:$0xff]  ;;  %v47_v6 = vld [vmem:[%s807_s2 + $0x38] sm:$0xff] }
   0x3   :  { %538 = vmatpush3.msra.mxu0 %v31_v0  ;;  %v45_v7 = vld [vmem:[%s807_s2 + $0x28] sm:$0xff]  ;;  %85 = vperm.xlu0 %581, %v47_v6   ;;  %v46_v9 = vld [vmem:[%s807_s2 + $0x30] sm:$0xff]  ;;  %v44_v11 = vld [vmem:[%s807_s2 + $0x20] sm:$0xff] }
   0x4   :  { %539 = vmatprep.subr.mxu0 %v30_v1  ;;  %v33_v8 = vld [vmem:[%s806_s1 + $0x8] sm:$0xff]  ;;  %75 = vperm.xlu1 %582, %v45_v7   ;;  %v34_v10 = vld [vmem:[%s806_s1 + $0x10] sm:$0xff] }
   0x5   :  { %540 = vmatpush3.msra.mxu0 %v30_v1 }
   0x6   :  { %541 = vmatprep.subr.mxu0 %v29_v4 }
   0x7   :  { %542 = vmatpush3.msra.mxu0 %v29_v4  ;;  %80 = vperm.xlu0 %581, %v46_v9  }
   0x8   :  { %543 = vmatprep.subr.mxu0 %v28_v5 }
   0x9   :  { %544 = vmatpush3.msra.mxu0 %v28_v5 }
   0xa   :  { %546 = vmatmul.mubr.msk.f32.vlgmr.msra.gmra.mxu0 %vm88_vm0, %v33_v8 }
   0xb   :  { %13 = vsyncpa [#allocation4], 0  ;;  %548 = vmatprep.mubr.msk.f32.mxu0 %vm88_vm0, %v34_v10  ;;  %v35_v12 = vld [vmem:[%s806_s1 + $0x18] sm:$0xff]  ;;  %70 = vperm.xlu1 %582, %v44_v11   ;;  %v36_v14 = vld [vmem:[%s806_s1 + $0x20] sm:$0xff]  ;;  %vm302_vm1 = vcmask 523264   ;;  %vm456_vm14 = vcmask 64512  }
   0xc   :  { %v43_v13 = vld [vmem:[%s807_s2 + $0x18] sm:$0xff]  ;;  %v42_v15 = vld [vmem:[%s807_s2 + $0x10] sm:$0xff]  ;;  %v37_v16 = vld [vmem:[%s806_s1 + $0x28] sm:$0xff]  ;;  %s630_s14 = smov [#allocation3]   ;;  %vm473_vm15 = vcmask 57344  }
   0xd   :  { %65 = vperm.xlu0 %581, %v43_v13   ;;  %v41_v17 = vld [vmem:[%s807_s2 + $0x8] sm:$0xff]  ;;  %v38_v18 = vld [vmem:[%s806_s1 + $0x30] sm:$0xff]  ;;  %v40_v19 = vld [vmem:[%s807_s2] sm:$0xff]  ;;  %s481_s15 = sshll.u32 %s630_s14, 4  ;;  %s482_s15 = int_to_ptr.vmem [resolvable:$true] %s481_s15 }
   0xe   :  { %549 = vmatmul.mubr.msk.f32.gmra.mxu0 %vm88_vm0, %v35_v12  ;;  %v39_v20 = vld [vmem:[%s806_s1 + $0x38] sm:$0xff]  ;;  %v278_v21 = vld [vmem:[%s809_s4] sm:$0xff]  ;;  %v279_v22 = vld [vmem:[%s809_s4 + $0x8] sm:$0xff]  ;;  %s607_s16 = scalar_lea.vmem %s482_s15, 16  ;;  %s611_s17 = scalar_lea.vmem %s482_s15, 32 }
   0xf   :  { %551 = vmatprep.mubr.msk.f32.mxu0 %vm88_vm0, %v36_v14  ;;  %60 = vperm.xlu1 %582, %v42_v15   ;;  %v280_v23 = vld [vmem:[%s809_s4 + $0x10] sm:$0xff]  ;;  %v281_v24 = vld [vmem:[%s809_s4 + $0x18] sm:$0xff]  ;;  %v428_v25 = vld [vmem:[%s810_s5] sm:$0xff]  ;;  %p608_p0 = scmp.ne.s32.totalorder %s482_s15, %s607_s16  ;;  %p612_p1 = scmp.lt.s32.totalorder %s482_s15, %s482_s15 }
  0x10   :  { %v429_v26 = vld [vmem:[%s810_s5 + $0x8] sm:$0xff]  ;;  %v430_v27 = vld [vmem:[%s810_s5 + $0x10] sm:$0xff]  ;;  %v431_v28 = vld [vmem:[%s810_s5 + $0x18] sm:$0xff]  ;;  %p613_p2 = scmp.lt.s32.totalorder %s611_s17, %s607_s16 }
  0x11   :  { %55 = vperm.xlu0 %581, %v41_v17   ;;  %v274_v29 = vld [vmem:[%s808_s3] sm:$0xff] }
  0x12   :  { %552 = vmatmul.mubr.msk.f32.gmra.mxu0 %vm88_vm0, %v37_v16  ;;  %573 = vmatprep.mubr.msk.f32.mxu1 %vm302_vm1, %v274_v29  ;;  %p614_p3 = por %p613_p2, %p612_p1 }
  0x13   :  { %554 = vmatprep.mubr.msk.f32.mxu0 %vm88_vm0, %v38_v18  ;;  %50 = vperm.xlu1 %582, %v40_v19  }
  0x14   :  { %p615_p4 = pnand %p614_p3, %p608_p0 }
  0x15   :  { %284 = vperm.xlu0 %581, %v278_v21  }
  0x16   :  { %555 = vmatmul.mubr.msk.f32.gmra.mxu0 %vm88_vm0, %v39_v20 }
  0x17   :  { %289 = vperm.xlu1 %582, %v279_v22  }
  0x19   :  { %294 = vperm.xlu0 %581, %v280_v23  }
  0x1b   :  { %299 = vperm.xlu1 %582, %v281_v24  }
  0x1d   :  { %434 = vperm.xlu0 %581, %v428_v25  }
  0x1f   :  { %439 = vperm.xlu1 %582, %v429_v26  }
  0x21   :  { %444 = vperm.xlu0 %581, %v430_v27  }
  0x23   :  { %449 = vperm.xlu1 %582, %v431_v28  }
  0x7e   :  { %v86_v30 = vpop.permute.xlu0 %85 }
  0x7f   :  { %v76_v31 = vpop.permute.xlu1 %75 }
  0x82   :  { %v81_v32 = vpop.permute.xlu0 %80 }
  0x86   :  { %v71_v34 = vpop.permute.xlu1 %70 }
  0x88   :  { %v66_v37 = vpop.permute.xlu0 %65 }
  0x8a   :  { %v61_v39 = vpop.permute.xlu1 %60 }
  0x8c   :  { %v56_v47 = vpop.permute.xlu0 %55 }
  0x8e   :  { %v51_v53 = vpop.permute.xlu1 %50 }
  0xca   :  { %v547_v33 = vpop.f32.mrf.mxu0 }
  0xcb   :  { %v772_v50 = vadd.f32 %v547_v33, %v56_v47 }
  0xcc   :  { %v179_v35 = vpop.f32.mrf.mxu0 }
  0xcd   :  { %v775_v56 = vadd.f32 %v179_v35, %v51_v53  ;;  %v228_v59 = vmul.f32 1.442695, %v772_v50  ;;  %vm219_vm8 = vcmp.gt.f32.partialorder %v772_v50, 0.0 }
  0xce   :  { %v550_v36 = vpop.f32.mrf.mxu0 }
  0xcf   :  { %v767_v40 = vadd.f32 %v550_v36, %v66_v37  ;;  %v226_v61 = vmul.f32 1.442695, %v775_v56  ;;  %vm218_vm9 = vcmp.gt.f32.partialorder %v775_v56, 0.0 }
  0xd0   :  { %v189_v38 = vpop.f32.mrf.mxu0 }
  0xd1   :  { %v769_v43 = vadd.f32 %v189_v38, %v61_v39  ;;  %v232_v48 = vmul.f32 1.442695, %v767_v40  ;;  %vm221_vm6 = vcmp.gt.f32.partialorder %v767_v40, 0.0  ;;  %v275_v38 = vld [vmem:[%s808_s3 + $0x8] sm:$0xff]  ;;  %v276_v39 = vld [vmem:[%s808_s3 + $0x10] sm:$0xff] }
  0xd2   :  { %v553_v41 = vpop.f32.mrf.mxu0 }
  0xd3   :  { %v205_v42 = vadd.f32 %v553_v41, %v76_v31  ;;  %v230_v54 = vmul.f32 1.442695, %v769_v43  ;;  %vm220_vm7 = vcmp.gt.f32.partialorder %v769_v43, 0.0  ;;  %v290_v41 = vpop.permute.xlu1 %289 }
  0xd4   :  { %v199_v44 = vpop.f32.mrf.mxu0 }
  0xd5   :  { %v236_v45 = vmul.f32 1.442695, %v205_v42  ;;  %v200_v46 = vadd.f32 %v199_v44, %v71_v34  ;;  %vm223_vm3 = vcmp.gt.f32.partialorder %v205_v42, 0.0 }
  0xd6   :  { %v556_v49 = vpop.f32.mrf.mxu0 }
  0xd7   :  { %583 = vpow2.f32 %v236_v45  ;;  %v234_v51 = vmul.f32 1.442695, %v200_v46  ;;  %v215_v52 = vadd.f32 %v556_v49, %v86_v30  ;;  %vm222_vm5 = vcmp.gt.f32.partialorder %v200_v46, 0.0 }
  0xd8   :  { %v209_v55 = vpop.f32.mrf.mxu0 }
  0xd9   :  { %585 = vpow2.f32 %v234_v51  ;;  %v240_v57 = vmul.f32 1.442695, %v215_v52  ;;  %v210_v58 = vadd.f32 %v209_v55, %v81_v32  ;;  %vm225_vm2 = vcmp.gt.f32.partialorder %v215_v52, 0.0 }
  0xda   :  { %587 = vpow2.f32 %v232_v48  ;;  %v300_v48 = vpop.permute.xlu1 %299 }
  0xdb   :  { %589 = vpow2.f32 %v240_v57  ;;  %v238_v60 = vmul.f32 1.442695, %v210_v58  ;;  %vm224_vm4 = vcmp.gt.f32.partialorder %v210_v58, 0.0 }
  0xdc   :  { %591 = vpow2.f32 %v230_v54 }
  0xdd   :  { %593 = vpow2.f32 %v238_v60 }
  0xde   :  { %595 = vpow2.f32 %v228_v59 }
  0xdf   :  { %597 = vpow2.f32 %v226_v61 }
  0xe4   :  { %v584_v62 = vpop.eup %583 }
  0xe5   :  { %v502_v1 = vadd.f32 -1.0, %v584_v62 }
  0xe6   :  { %v586_v63 = vpop.eup %585 }
  0xe7   :  { %v588_v0 = vpop.eup %587  ;;  %v501_v4 = vadd.f32 -1.0, %v586_v63  ;;  %v255_v10 = vmul.f32 1.6732632, %v502_v1 }
  0xe8   :  { %v590_v2 = vpop.eup %589  ;;  %v500_v7 = vadd.f32 -1.0, %v588_v0 }
  0xe9   :  { %v592_v3 = vpop.eup %591  ;;  %v504_v5 = vadd.f32 -1.0, %v590_v2  ;;  %v254_v15 = vmul.f32 1.6732632, %v501_v4  ;;  %v263_v20 = vsel %vm223_vm3, %v205_v42, %v255_v10  ;;  %v285_v42 = vpop.permute.xlu0 %284 }
  0xea   :  { %v594_v6 = vpop.eup %593  ;;  %v499_v12 = vadd.f32 -1.0, %v592_v3  ;;  %v253_v21 = vmul.f32 1.6732632, %v500_v7  ;;  %v271_v26 = vmul.f32 1.050701, %v263_v20 }
  0xeb   :  { %v503_v8 = vadd.f32 -1.0, %v594_v6  ;;  %v257_v9 = vmul.f32 1.6732632, %v504_v5  ;;  %v596_v11 = vpop.eup %595  ;;  %v262_v24 = vsel %vm222_vm5, %v200_v46, %v254_v15  ;;  %v440_v5 = vpop.permute.xlu1 %439 }
  0xec   :  { %v598_v16 = vpop.eup %597  ;;  %v498_v18 = vadd.f32 -1.0, %v596_v11  ;;  %v252_v25 = vmul.f32 1.6732632, %v499_v12  ;;  %v261_v27 = vsel %vm221_vm6, %v767_v40, %v253_v21  ;;  %v270_v29 = vmul.f32 1.050701, %v262_v24  ;;  %v277_v40 = vld [vmem:[%s808_s3 + $0x18] sm:$0xff] }
  0xed   :  { %v265_v13 = vsel %vm225_vm2, %v215_v52, %v257_v9  ;;  %v256_v14 = vmul.f32 1.6732632, %v503_v8  ;;  %v497_v23 = vadd.f32 -1.0, %v598_v16  ;;  %v269_v32 = vmul.f32 1.050701, %v261_v27  ;;  %v295_v52 = vpop.permute.xlu0 %294 }
  0xee   :  { %v273_v17 = vmul.f32 1.050701, %v265_v13  ;;  %v251_v28 = vmul.f32 1.6732632, %v498_v18  ;;  %v260_v30 = vsel %vm220_vm7, %v769_v43, %v252_v25 }
  0xef   :  { %v264_v19 = vsel %vm224_vm4, %v210_v58, %v256_v14  ;;  %v250_v31 = vmul.f32 1.6732632, %v497_v23  ;;  %v268_v34 = vmul.f32 1.050701, %v260_v30 }
  0xf0   :  { %557 = vmatprep.subr.mxu1 %v273_v17  ;;  %v272_v22 = vmul.f32 1.050701, %v264_v19  ;;  %v259_v33 = vsel %vm219_vm8, %v772_v50, %v251_v28  ;;  %v450_v19 = vpop.permute.xlu1 %449 }
  0xf1   :  { %558 = vmatpush3.msra.mxu1 %v273_v17  ;;  %v258_v35 = vsel %vm218_vm9, %v775_v56, %v250_v31  ;;  %v267_v36 = vmul.f32 1.050701, %v259_v33  ;;  %v435_v4 = vpop.permute.xlu0 %434  ;;  %v471_v33 = vstv %s811_s6 }
  0xf2   :  { %559 = vmatprep.subr.mxu1 %v272_v22  ;;  %v266_v37 = vmul.f32 1.050701, %v258_v35 }
  0xf3   :  { %560 = vmatpush3.msra.mxu1 %v272_v22 }
  0xf4   :  { %561 = vmatprep.subr.mxu1 %v271_v26 }
  0xf5   :  { %562 = vmatpush3.msra.mxu1 %v271_v26  ;;  %v445_v18 = vpop.permute.xlu0 %444 }
  0xf6   :  { %563 = vmatprep.subr.mxu1 %v270_v29 }
  0xf7   :  { %564 = vmatpush3.msra.mxu1 %v270_v29 }
  0xf8   :  { %565 = vmatprep.subr.mxu1 %v269_v32 }
  0xf9   :  { %566 = vmatpush3.msra.mxu1 %v269_v32 }
  0xfa   :  { %567 = vmatprep.subr.mxu1 %v268_v34 }
  0xfb   :  { %568 = vmatpush3.msra.mxu1 %v268_v34 }
  0xfc   :  { %569 = vmatprep.subr.mxu1 %v267_v36 }
  0xfd   :  { %570 = vmatpush3.msra.mxu1 %v267_v36 }
  0xfe   :  { %571 = vmatprep.subr.mxu1 %v266_v37 }
  0xff   :  { %572 = vmatpush3.msra.mxu1 %v266_v37 }
 0x100   :  { %574 = vmatmul.mubr.msk.f32.vlgmr.msra.gmra.mxu1 %vm302_vm1, %v275_v38 }
 0x101   :  { %576 = vmatprep.mubr.msk.f32.mxu1 %vm302_vm1, %v276_v39 }
 0x104   :  { %577 = vmatmul.mubr.msk.f32.gmra.mxu1 %vm302_vm1, %v277_v40 }
 0x1c0   :  { %v575_v43 = vpop.f32.mrf.mxu1 }
 0x1c1   :  { %v387_v44 = vadd.f32 %v575_v43, %v290_v41 }
 0x1c2   :  { %v381_v45 = vpop.f32.mrf.mxu1 }
 0x1c3   :  { %v406_v46 = vmul.f32 1.442695, %v387_v44  ;;  %v382_v47 = vadd.f32 %v381_v45, %v285_v42  ;;  %vm401_vm10 = vcmp.gt.f32.partialorder %v387_v44, 0.0 }
 0x1c4   :  { %v578_v49 = vpop.f32.mrf.mxu1 }
 0x1c5   :  { %599 = vpow2.f32 %v406_v46  ;;  %v404_v50 = vmul.f32 1.442695, %v382_v47  ;;  %v397_v51 = vadd.f32 %v578_v49, %v300_v48  ;;  %vm400_vm11 = vcmp.gt.f32.partialorder %v382_v47, 0.0 }
 0x1c6   :  { %v391_v53 = vpop.f32.mrf.mxu1 }
 0x1c7   :  { %601 = vpow2.f32 %v404_v50  ;;  %v410_v54 = vmul.f32 1.442695, %v397_v51  ;;  %v392_v55 = vadd.f32 %v391_v53, %v295_v52  ;;  %vm403_vm12 = vcmp.gt.f32.partialorder %v397_v51, 0.0 }
 0x1c9   :  { %603 = vpow2.f32 %v410_v54  ;;  %v408_v56 = vmul.f32 1.442695, %v392_v55  ;;  %vm402_vm13 = vcmp.gt.f32.partialorder %v392_v55, 0.0 }
 0x1cb   :  { %605 = vpow2.f32 %v408_v56 }
 0x1d2   :  { %v600_v57 = vpop.eup %599 }
 0x1d3   :  { %v510_v58 = vadd.f32 -1.0, %v600_v57 }
 0x1d4   :  { %v602_v59 = vpop.eup %601 }
 0x1d5   :  { %v417_v60 = vmul.f32 1.6732632, %v510_v58  ;;  %v509_v61 = vadd.f32 -1.0, %v602_v59 }
 0x1d6   :  { %v604_v62 = vpop.eup %603 }
 0x1d7   :  { %v421_v63 = vsel %vm401_vm10, %v387_v44, %v417_v60  ;;  %v416_v0 = vmul.f32 1.6732632, %v509_v61  ;;  %v512_v1 = vadd.f32 -1.0, %v604_v62 }
 0x1d8   :  { %v606_v2 = vpop.eup %605  ;;  %v425_v3 = vmul.f32 1.050701, %v421_v63 }
 0x1d9   :  { %v420_v6 = vsel %vm400_vm11, %v382_v47, %v416_v0  ;;  %v419_v7 = vmul.f32 1.6732632, %v512_v1  ;;  %v511_v8 = vadd.f32 -1.0, %v606_v2 }
 0x1da   :  { %v424_v9 = vmul.f32 1.050701, %v420_v6  ;;  %v453_v12 = vmul.f32 %v440_v5, %v425_v3 }
 0x1db   :  { %v423_v10 = vsel %vm403_vm12, %v397_v51, %v419_v7  ;;  %v418_v11 = vmul.f32 1.6732632, %v511_v8 }
 0x1dc   :  { %v452_v13 = vmul.f32 %v435_v4, %v424_v9  ;;  %v427_v14 = vmul.f32 1.050701, %v423_v10  ;;  %v458_v20 = vsel %vm456_vm14, %v453_v12, 0.0 }
 0x1dd   :  { %v422_v15 = vsel %vm402_vm13, %v392_v55, %v418_v11 }
 0x1de   :  { %v457_v16 = vsel %vm456_vm14, %v452_v13, 0.0  ;;  %v426_v17 = vmul.f32 1.050701, %v422_v15  ;;  %v455_v21 = vmul.f32 %v450_v19, %v427_v14 }
 0x1df   :  { %v459_v23 = vadd.f32 %v458_v20, %v457_v16 }
 0x1e0   :  { %v454_v22 = vmul.f32 %v445_v18, %v426_v17  ;;  %v462_v26 = vsel %vm456_vm14, %v455_v21, 0.0 }
 0x1e2   :  { %v460_v24 = vsel %vm456_vm14, %v454_v22, 0.0 }
 0x1e3   :  { %v461_v25 = vadd.f32 %v460_v24, %v459_v23 }
 0x1e5   :  { %v463_v27 = vadd.f32 %v462_v26, %v461_v25 }
 0x1e7   :  { %v464_v28 = vrot.slane %v463_v27, 4 }
 0x1e9   :  { %v465_v29 = vadd.f32 %v464_v28, %v463_v27 }
 0x1eb   :  { %v466_v30 = vrot.slane %v465_v29, 2 }
 0x1ed   :  { %v467_v31 = vadd.f32 %v466_v30, %v465_v29 }
 0x1ef   :  { %v468_v32 = vrot.slane %v467_v31, 1 }
 0x1f1   :  { %v469_v34 = vadd.f32 %v468_v32, %v467_v31 }
 0x1f3   :  { %v472_v35 = vadd.f32 %v471_v33, %v469_v34 }
 0x1f5   :  { %474 = vst.msk [vmem:[#allocation3] sm:$0x1] %vm473_vm15, %v472_v35 }
 0x1f6   :  { %618 = shalt.err (!%p615_p4)
}
 0x1f7   :  { %484 = dma.vmem_to_hbm [thread:$0]  %s482_s15, 16, %s812_s7, [#allocation4]  }
 0x1f8   :  { %627 = dma.done.wait [#allocation4], 16  }
 0x1f9   :  { %628 = vsyncadd [#allocation4], 4294967280 }
 0x1fa   :  { %488 = vsyncpa [#allocation4], 1 }

</bundles_post_ra>
